<compile_context>
chip_gen: v7x
topology: tpu7x:2x2x1
jax: 0.10.0
libtpu: 0.0.40
codegen_flags: <defaults>
</compile_context>

<pallas_src>
import jax
import jax.numpy as jnp
from jax.experimental import pallas as pl
from jax.experimental.pallas import tpu as pltpu


def _round_up(x, m):
    return (x + m - 1) // m * m


def _lamlp_kernel(x_ref, w1_ref, b1_ref, w2_ref, b2_ref, o_ref):
    """Fused: block-diag first linear + relu, second linear, log_softmax."""
    # First (block-diagonal) linear == per-branch Linear + ReLU + concat.
    h = jnp.dot(x_ref[...], w1_ref[...], preferred_element_type=jnp.float32)
    h = jnp.maximum(h + b1_ref[...], 0.0)            # f32, [tm, hd_pad]

    # Second linear (hd_pad -> nc_pad).  Padded classes carry bias -1e30 so
    # they contribute nothing to the softmax below.
    logits = jnp.dot(h.astype(w2_ref.dtype), w2_ref[...],
                     preferred_element_type=jnp.float32) + b2_ref[...]

    # Numerically stable log_softmax on a lane-dense (multiple-of-128) block:
    # single full-lane XLU reduces, exp/log land on the otherwise-idle EUP slot.
    m = jnp.max(logits, axis=-1, keepdims=True)
    s = logits - m
    lse = jnp.log(jnp.sum(jnp.exp(s), axis=-1, keepdims=True))
    o_ref[...] = (s - lse).astype(o_ref.dtype)


def lamlp_forward(x_list, weights, biases, w2, b2, *,
                  dtype=jnp.float32, tm=None,
                  vmem_budget_bytes=16 << 20):
    """Fused LAMLP forward.

    x_list:  list of [N, dim_k] arrays
    weights: list of [dim_k, hd_k] arrays   (pre-transposed nn.Linear weights)
    biases:  list of [1, hd_k]  arrays
    w2:      [hd_total, nclass]
    b2:      [1, nclass]
    dtype:   compute dtype for x / weights (f32 or bf16); accumulation is f32.
    """
    f32 = jnp.float32
    n = x_list[0].shape[0]
    dims = [x.shape[1] for x in x_list]
    hds = [w.shape[1] for w in weights]
    dim_total = sum(dims)
    hd_total = sum(hds)
    nclass = w2.shape[1]

    # Lane-friendly padded sizes (hidden + class dims -> multiples of 128).
    hd_pad = _round_up(hd_total, 128)
    nc_pad = _round_up(nclass, 128)

    # --- Build block-diagonal first-layer weight + concatenated bias (trace time).
    w1_bd = jnp.zeros((dim_total, hd_pad), f32)
    r = c = 0
    for w in weights:
        dk, hk = w.shape
        w1_bd = w1_bd.at[r:r + dk, c:c + hk].set(w.astype(f32))
        r += dk
        c += hk
    b1 = jnp.zeros((1, hd_pad), f32)
    b1 = b1.at[:, :hd_total].set(
        jnp.concatenate([b.reshape(1, -1).astype(f32) for b in biases], axis=-1))

    # --- Pad second-layer weight / bias.  Padded hidden rows are zero (h there
    # is relu(0+0)=0 anyway); padded classes get -1e30 bias => exp -> 0.
    w2p = jnp.zeros((hd_pad, nc_pad), f32).at[:hd_total, :nclass].set(w2.astype(f32))
    b2p = jnp.full((1, nc_pad), -1e30, f32).at[:, :nclass].set(
        b2.reshape(1, -1).astype(f32))

    # --- Concatenate input branches once, outside the kernel (XLA-side).
    xcat = jnp.concatenate([x.astype(f32) for x in x_list], axis=-1)

    # Compute dtype (bf16 halves the streamed-activation HBM bytes on v6e/v7x).
    xcat = xcat.astype(dtype)
    w1_bd = w1_bd.astype(dtype)
    w2p = w2p.astype(dtype)
    # biases stay f32 (added to the f32 accumulators).

    # --- Row-tile selection from a VMEM budget (double-buffered x + f32 out),
    # sized conservatively so it also fits v7x's 32 MiB scoped / 64 MiB physical.
    itemsz = jnp.dtype(dtype).itemsize
    if tm is None:
        per_row = 2 * dim_total * itemsz + 2 * nc_pad * 4
        tm = 1024
        while tm > 8 and tm * per_row > vmem_budget_bytes:
            tm //= 2
    tm = int(tm)
    tm = max(8, min(tm, _round_up(n, 8)))
    tm = (tm // 8) * 8

    n_pad = _round_up(n, tm)
    if n_pad != n:
        xcat = jnp.pad(xcat, ((0, n_pad - n), (0, 0)))
    grid = (n_pad // tm,)

    in_specs = [
        pl.BlockSpec((tm, dim_total), lambda i: (i, 0)),          # xcat tile
        pl.BlockSpec((dim_total, hd_pad), lambda i: (0, 0)),      # W1 block-diag
        pl.BlockSpec((1, hd_pad), lambda i: (0, 0)),              # b1
        pl.BlockSpec((hd_pad, nc_pad), lambda i: (0, 0)),         # W2 (padded)
        pl.BlockSpec((1, nc_pad), lambda i: (0, 0)),              # b2 (padded)
    ]
    out_specs = pl.BlockSpec((tm, nc_pad), lambda i: (i, 0))      # lane-dense out

    out_pad = pl.pallas_call(
        _lamlp_kernel,
        out_shape=jax.ShapeDtypeStruct((n_pad, nc_pad), jnp.float32),
        grid_spec=pltpu.PrefetchScalarGridSpec(
            num_scalar_prefetch=0,
            grid=grid,
            in_specs=in_specs,
            out_specs=out_specs,
        ),
        compiler_params=pltpu.CompilerParams(
            dimension_semantics=("parallel",),
            vmem_limit_bytes=32 * 1024 * 1024,
        ),
    )(xcat, w1_bd, b1, w2p, b2p)

    return out_pad[:n, :nclass]


def lamlp_reference(x_list, weights, biases, w2, b2):
    """Pure-JAX reference (mirrors the PyTorch forward in eval mode)."""
    hs = [jnp.maximum(x @ w + b, 0.0) for x, w, b in zip(x_list, weights, biases)]
    h = jnp.concatenate(hs, axis=-1)
    logits = h @ w2 + b2
    return jax.nn.log_softmax(logits, axis=-1)


if __name__ == "__main__":
    # Small problem consistent with the module's forward (2 branches, layer_num=2).
    N = 300                    # non-multiple of the tile -> exercises padded tail
    dim_list = [16, 32]        # per-branch input feature dims
    hd_list = [32, 16]         # per-branch hidden dims  (hd_total = 48)
    nclass = 8

    key = jax.random.PRNGKey(0)
    keys = jax.random.split(key, 2 * len(dim_list) + 2 * len(hd_list) + 2)

    x_list = [
        jax.random.normal(keys[i], (N, d), dtype=jnp.float32)
        for i, d in enumerate(dim_list)
    ]

    off = len(dim_list)
    weights = [
        0.1 * jax.random.normal(keys[off + i], (dim_list[i], hd_list[i]),
                                dtype=jnp.float32)
        for i in range(len(dim_list))
    ]
    off += len(dim_list)
    biases = [
        0.1 * jax.random.normal(keys[off + i], (1, hd_list[i]), dtype=jnp.float32)
        for i in range(len(hd_list))
    ]
    off += len(hd_list)
    hd_total = sum(hd_list)
    w2 = 0.1 * jax.random.normal(keys[off], (hd_total, nclass), dtype=jnp.float32)
    b2 = 0.1 * jax.random.normal(keys[off + 1], (1, nclass), dtype=jnp.float32)

    ref = lamlp_reference(x_list, weights, biases, w2, b2)

    # f32 path, explicit small tile -> multi-step grid with a padded tail.
    out_f32 = lamlp_forward(x_list, weights, biases, w2, b2,
                            dtype=jnp.float32, tm=128)
    out_f32 = jax.block_until_ready(out_f32)
    assert out_f32.shape == (N, nclass)
    assert jnp.allclose(out_f32, ref, atol=1e-5, rtol=1e-5), "f32 mismatch vs reference"

    # bf16 activations/weights (f32 accumulation), default tile selection.
    out_bf16 = lamlp_forward(x_list, weights, biases, w2, b2, dtype=jnp.bfloat16)
    out_bf16 = jax.block_until_ready(out_bf16)
    assert out_bf16.shape == (N, nclass)
    assert jnp.allclose(out_bf16, ref, atol=5e-2, rtol=5e-2), "bf16 mismatch vs reference"

    print("KERNEL_OK")
</pallas_src>

<mosaic_0001>
module attributes {stable_mosaic.version = 11 : i64} {
  func.func @_lamlp_kernel(%arg0: i32, %arg1: memref<128x48xf32, #tpu.memory_space<vmem>>, %arg2: memref<48x128xf32, #tpu.memory_space<vmem>>, %arg3: memref<1x128xf32, #tpu.memory_space<vmem>>, %arg4: memref<128x128xf32, #tpu.memory_space<vmem>>, %arg5: memref<1x128xf32, #tpu.memory_space<vmem>>, %arg6: memref<128x128xf32, #tpu.memory_space<vmem>>) attributes {dimension_semantics = [#tpu.dimension_semantics<parallel>], iteration_bounds = array<i64: 3>, scalar_prefetch = 0 : i64, scratch_operands = 0 : i64, tpu.core_type = #tpu.core_type<tc>, window_params = [{transform_indices = @transform_0, window_bounds = array<i64: 128, 48>}, {pipeline_mode = #tpu.pipeline_mode<synchronous>, transform_indices = @transform_1, window_bounds = array<i64: 48, 128>}, {pipeline_mode = #tpu.pipeline_mode<synchronous>, transform_indices = @transform_2, window_bounds = array<i64: 1, 128>}, {pipeline_mode = #tpu.pipeline_mode<synchronous>, transform_indices = @transform_3, window_bounds = array<i64: 128, 128>}, {pipeline_mode = #tpu.pipeline_mode<synchronous>, transform_indices = @transform_4, window_bounds = array<i64: 1, 128>}, {transform_indices = @transform_5, window_bounds = array<i64: 128, 128>}]} {
    %c0 = arith.constant 0 : index
    %c0_0 = arith.constant 0 : index
    %0 = vector.load %arg1[%c0, %c0_0] : memref<128x48xf32, #tpu.memory_space<vmem>>, vector<128x48xf32>
    %c0_1 = arith.constant 0 : index
    %c0_2 = arith.constant 0 : index
    %1 = vector.load %arg2[%c0_1, %c0_2] : memref<48x128xf32, #tpu.memory_space<vmem>>, vector<48x128xf32>
    %cst = arith.constant dense<0.000000e+00> : vector<128x128xf32>
    %2 = tpu.matmul %0, %1, %cst {dimension_numbers = #tpu.dot_dimension_numbers<[1], [0], [0], [1], [0, 0, 1, 1], [], []>} : vector<128x48xf32>, vector<48x128xf32>, vector<128x128xf32> -> vector<128x128xf32>
    %c0_3 = arith.constant 0 : index
    %c0_4 = arith.constant 0 : index
    %3 = vector.load %arg3[%c0_3, %c0_4] : memref<1x128xf32, #tpu.memory_space<vmem>>, vector<1x128xf32>
    %4 = vector.broadcast %3 : vector<1x128xf32> to vector<128x128xf32>
    %5 = arith.addf %2, %4 : vector<128x128xf32>
    %cst_5 = arith.constant 0.000000e+00 : f32
    %6 = vector.broadcast %cst_5 : f32 to vector<128x128xf32>
    %7 = arith.maximumf %5, %6 : vector<128x128xf32>
    %c0_6 = arith.constant 0 : index
    %c0_7 = arith.constant 0 : index
    %8 = vector.load %arg4[%c0_6, %c0_7] : memref<128x128xf32, #tpu.memory_space<vmem>>, vector<128x128xf32>
    %cst_8 = arith.constant dense<0.000000e+00> : vector<128x128xf32>
    %9 = tpu.matmul %7, %8, %cst_8 {dimension_numbers = #tpu.dot_dimension_numbers<[1], [0], [0], [1], [0, 0, 1, 1], [], []>} : vector<128x128xf32>, vector<128x128xf32>, vector<128x128xf32> -> vector<128x128xf32>
    %c0_9 = arith.constant 0 : index
    %c0_10 = arith.constant 0 : index
    %10 = vector.load %arg5[%c0_9, %c0_10] : memref<1x128xf32, #tpu.memory_space<vmem>>, vector<1x128xf32>
    %11 = vector.broadcast %10 : vector<1x128xf32> to vector<128x128xf32>
    %12 = arith.addf %9, %11 : vector<128x128xf32>
    %cst_11 = arith.constant dense<0xFF800000> : vector<128xf32>
    %13 = vector.multi_reduction <maximumf>, %12, %cst_11 [1] : vector<128x128xf32> to vector<128xf32>
    %14 = vector.shape_cast %13 : vector<128xf32> to vector<128x1xf32>
    %15 = vector.broadcast %14 : vector<128x1xf32> to vector<128x128xf32>
    %16 = arith.subf %12, %15 : vector<128x128xf32>
    %17 = math.exp %16 : vector<128x128xf32>
    %cst_12 = arith.constant dense<0.000000e+00> : vector<128xf32>
    %18 = vector.multi_reduction <add>, %17, %cst_12 [1] : vector<128x128xf32> to vector<128xf32>
    %19 = vector.shape_cast %18 : vector<128xf32> to vector<128x1xf32>
    %20 = math.log %19 : vector<128x1xf32>
    %21 = vector.broadcast %20 : vector<128x1xf32> to vector<128x128xf32>
    %22 = arith.subf %16, %21 : vector<128x128xf32>
    %c0_13 = arith.constant 0 : index
    %c0_14 = arith.constant 0 : index
    %23 = vector.load %arg6[%c0_13, %c0_14] : memref<128x128xf32, #tpu.memory_space<vmem>>, vector<128x128xf32>
    tpu.vector_store %arg6[%c0_13, %c0_14], %22 {strides = array<i32>} : memref<128x128xf32, #tpu.memory_space<vmem>>, vector<128x128xf32>,
    return
  }
  func.func @transform_0(%arg0: i32) -> (i32, i32) {
    %c0_i32 = arith.constant 0 : i32
    %c0_i32_0 = arith.constant 0 : i32
    return %arg0, %c0_i32 : i32, i32
  }
  func.func @transform_1(%arg0: i32) -> (i32, i32) {
    %c0_i32 = arith.constant 0 : i32
    %c0_i32_0 = arith.constant 0 : i32
    %c0_i32_1 = arith.constant 0 : i32
    return %c0_i32, %c0_i32_0 : i32, i32
  }
  func.func @transform_2(%arg0: i32) -> (i32, i32) {
    %c0_i32 = arith.constant 0 : i32
    %c0_i32_0 = arith.constant 0 : i32
    %c0_i32_1 = arith.constant 0 : i32
    return %c0_i32, %c0_i32_0 : i32, i32
  }
  func.func @transform_3(%arg0: i32) -> (i32, i32) {
    %c0_i32 = arith.constant 0 : i32
    %c0_i32_0 = arith.constant 0 : i32
    %c0_i32_1 = arith.constant 0 : i32
    return %c0_i32, %c0_i32_0 : i32, i32
  }
  func.func @transform_4(%arg0: i32) -> (i32, i32) {
    %c0_i32 = arith.constant 0 : i32
    %c0_i32_0 = arith.constant 0 : i32
    %c0_i32_1 = arith.constant 0 : i32
    return %c0_i32, %c0_i32_0 : i32, i32
  }
  func.func @transform_5(%arg0: i32) -> (i32, i32) {
    %c0_i32 = arith.constant 0 : i32
    %c0_i32_0 = arith.constant 0 : i32
    return %arg0, %c0_i32 : i32, i32
  }
}

</mosaic_0001>

<bundles_post_ra>
// kernel: tpu_custom_call.1
= control target key start
LH: loop header
LB: loop body
LE: loop exit
PB: predicated region body
PF: predicated region fallthrough
CT: control target
= control target key end

     0   :  { %10 = vsyncpa [#allocation3], 0  ;;  %s1635_s0 = inlined_call_operand.vmem [shape: f32[384,48], index: 0, kind: input, shape index: {}]   ;;  %s1636_s1 = inlined_call_operand.vmem [shape: f32[48,128], index: 1, kind: input, shape index: {}]   ;;  %s1637_s2 = inlined_call_operand.vmem [shape: f32[1,128], index: 2, kind: input, shape index: {}]   ;;  %s1638_s3 = inlined_call_operand.vmem [shape: f32[128,128], index: 3, kind: input, shape index: {}]   ;;  %s1639_s4 = inlined_call_operand.vmem [shape: f32[1,128], index: 4, kind: input, shape index: {}]   ;;  %s1640_s5 = inlined_call_operand.hbm [shape: f32[384,128], index: 5, kind: output, shape index: {}]  }
   0x1   :  { %12 = vsyncpa [#allocation3 + $0x1], 0  ;;  %s1324_s18 = smov 0   ;;  %s1326_s19 = smov 0  }
   0x2   :  { %s1328_s20 = smov 0   ;;  %s1330_s21 = smov 0  }
   0x3 LB: > { %s1345_s22 = sadd.s32 4294967295, %s1289_s21   ;;  %s885_s23 = sadd.s32 4294967294, %s1289_s21   ;;  %s1289_s21 = sphi %s1330_s21, %s1646_s21   ;;  %s1285_s20 = sphi %s1328_s20, %s1645_s20   ;;  %s1281_s19 = sphi %s1326_s19, %s1644_s19   ;;  %s1277_s18 = sphi %s1324_s18, %s1643_s18  }
   0x4   : > { %s1349_s24 = sadd.s32 1, %s1289_s21   ;;  %s135_s25 = sadd.s32 1, %s1285_s20 }
   0x5   : > { %s132_s26 = ssub.s32 %s1289_s21, %s1349_s24  ;;  %p145_p0 = scmp.ne.s32.totalorder %s1285_s20, %s1281_s19 }
   0x6   : > { %p133_p1 = scmp.eq.s32.totalorder %s132_s26, 0  ;;  %p146_p2 = scmp.eq.s32.totalorder %s1345_s22, 2 }
   0x7   : > { %p151_p3 = scmp.ne.s32.totalorder %s1281_s19, %s1277_s18  ;;  %p152_p4 = scmp.eq.s32.totalorder %s885_s23, 2 }
   0x8   : > { %s1360_s27 = scalar_select %p133_p1, %s1285_s20, %s135_s25  }
   0x9   : > { %p1362_p5 = por %p146_p2, %p145_p0  ;;  %p1366_p6 = por %p152_p4, %p151_p3 }
   0xa   : > { %p888_p7 = scmp.ge.s32.totalorder %s1289_s21, 1  ;;  %p191_p8 = scmp.lt.s32.totalorder %s1289_s21, 4 }
   0xc   : > { %p192_p9 = pnand %p888_p7, %p191_p8 }
   0xd   : > { %v242_v0 = vld [vmem:[%s1636_s1] sm:$0xff] (!%p192_p9)  ;;  %v243_v1 = vld [vmem:[%s1636_s1 + $0x8] sm:$0xff] (!%p192_p9)  ;;  %v244_v2 = vld [vmem:[%s1636_s1 + $0x10] sm:$0xff] (!%p192_p9)  ;;  %s890_s11 = sshll.u32 (!%p192_p9), %s1345_s22, 4  ;;  %vm255_vm0 = vcmask (!%p192_p9), 392192   ;;  %s915_s15 = sshll.u32 (!%p192_p9), %s1345_s22, 11 }
   0xe   : > { %195 = sbr.rel (%p192_p9) target bundleno = 822 (0x336), region = 40  ;;  %v1062_v3 = vpack.c.bf16 (!%p192_p9), %v243_v1, %v242_v0  ;;  %v245_v4 = vld [vmem:[%s1636_s1 + $0x18] sm:$0xff] (!%p192_p9)  ;;  %v246_v5 = vld [vmem:[%s1636_s1 + $0x20] sm:$0xff] (!%p192_p9)  ;;  %v247_v6 = vld [vmem:[%s1636_s1 + $0x28] sm:$0xff] (!%p192_p9)  ;;  %p220_p10 = scmp.lt.s32.totalorder (!%p192_p9), %s890_s11, 47 }
   0xf   : > { %v1066_v7 = vpack.c.bf16 (!%p192_p9), %v245_v4, %v244_v2  ;;  %v465_v8 = vld [vmem:[%s1638_s3] sm:$0xff] (!%p192_p9)  ;;  %v466_v9 = vld [vmem:[%s1638_s3 + $0x8] sm:$0xff] (!%p192_p9)  ;;  %v467_v10 = vld [vmem:[%s1638_s3 + $0x10] sm:$0xff] (!%p192_p9)  ;;  %v1070_v13 = vpack.c.bf16 (!%p192_p9), %v247_v6, %v246_v5  ;;  %s1291_s26 = smov (!%p192_p9), [#allocation2]  }
  0x10   : > { %1063 = vmatprep.subr.bf16.mxu0 (!%p192_p9), %v1062_v3  ;;  %v1074_v11 = vpack.c.bf16 (!%p192_p9), %v466_v9, %v465_v8  ;;  %v468_v12 = vld [vmem:[%s1638_s3 + $0x18] sm:$0xff] (!%p192_p9)  ;;  %v469_v15 = vld [vmem:[%s1638_s3 + $0x20] sm:$0xff] (!%p192_p9)  ;;  %v470_v16 = vld [vmem:[%s1638_s3 + $0x28] sm:$0xff] (!%p192_p9)  ;;  %s1231_s30 = sshll.u32 (!%p192_p9), %s1291_s26, 4  ;;  %s1232_s30 = int_to_ptr.vmem [resolvable:$false] %s1231_s30 }
  0x11   : > { %1065 = vmatpush3.bf16.msra.mxu0 (!%p192_p9), %v1062_v3  ;;  %v1078_v14 = vpack.c.bf16 (!%p192_p9), %v468_v12, %v467_v10  ;;  %v1082_v18 = vpack.c.bf16 (!%p192_p9), %v470_v16, %v469_v15  ;;  %v471_v19 = vld [vmem:[%s1638_s3 + $0x30] sm:$0xff] (!%p192_p9)  ;;  %v472_v20 = vld [vmem:[%s1638_s3 + $0x38] sm:$0xff] (!%p192_p9)  ;;  %v473_v24 = vld [vmem:[%s1638_s3 + $0x40] sm:$0xff] (!%p192_p9)  ;;  %s1233_s6 = scalar_lea.vmem (!%p192_p9), %s1232_s30, 4096 }
  0x12   : > { %1067 = vmatprep.subr.bf16.mxu0 (!%p192_p9), %v1066_v7  ;;  %1106 = vmatprep.subr.bf16.mxu1 (!%p192_p9), %v1074_v11  ;;  %v1086_v23 = vpack.c.bf16 (!%p192_p9), %v472_v20, %v471_v19  ;;  %v474_v25 = vld [vmem:[%s1638_s3 + $0x48] sm:$0xff] (!%p192_p9)  ;;  %v475_v29 = vld [vmem:[%s1638_s3 + $0x50] sm:$0xff] (!%p192_p9)  ;;  %v476_v30 = vld [vmem:[%s1638_s3 + $0x58] sm:$0xff] (!%p192_p9) }
  0x13   : > { %1114 = vmatpush3.bf16.msra.mxu1 (!%p192_p9), %v1074_v11  ;;  %v1090_v28 = vpack.c.bf16 (!%p192_p9), %v474_v25, %v473_v24  ;;  %v1094_v33 = vpack.c.bf16 (!%p192_p9), %v476_v30, %v475_v29  ;;  %v477_v34 = vld [vmem:[%s1638_s3 + $0x60] sm:$0xff] (!%p192_p9)  ;;  %v478_v35 = vld [vmem:[%s1638_s3 + $0x68] sm:$0xff] (!%p192_p9)  ;;  %v479_v46 = vld [vmem:[%s1638_s3 + $0x70] sm:$0xff] (!%p192_p9) }
  0x14   : > { %1107 = vmatprep.subr.bf16.mxu1 (!%p192_p9), %v1078_v14  ;;  %v1098_v38 = vpack.c.bf16 (!%p192_p9), %v478_v35, %v477_v34  ;;  %v480_v47 = vld [vmem:[%s1638_s3 + $0x78] sm:$0xff] (!%p192_p9)  ;;  %v892_v49 = vld [vmem:[%s1637_s2] ss:$0 sm:$0xff] (!%p192_p9) }
  0x15   : > { %s1648_s11 = smov (!%p220_p10, %s890_s11), 47  ;;  %1069 = vmatpush3.bf16.msra.mxu0 %v1066_v7  ;;  %v1102_v48 = vpack.c.bf16 %v480_v47, %v479_v46  ;;  %v909_v34 = vld [vmem:[%s1639_s4] ss:$0 sm:$0xff] }
  0x16   : > { %s891_s10 = sshll.u32 %s1648_s11, 3  ;;  %1071 = vmatprep.subr.bf16.mxu0 %v1070_v13  ;;  %s1585_s11 = scalar_lea.hbm %s1640_s5, %s915_s15 }
  0x17   : > { %s1406_s14 = scalar_lea.vmem %s1635_s0, %s891_s10  ;;  %1115 = vmatpush3.bf16.msra.mxu1 %v1078_v14  ;;  %s216_s10 = sand.u32 1, %s1281_s19  }
  0x18   : > { %v226_v17 = vld [vmem:[%s1406_s14] sm:$0xff]  ;;  %1108 = vmatprep.subr.bf16.mxu1 %v1082_v18  ;;  %v227_v21 = vld [vmem:[%s1406_s14 + $0x8] sm:$0xff]  ;;  %v228_v22 = vld [vmem:[%s1406_s14 + $0x10] sm:$0xff]  ;;  %s889_s12 = sshll.u32 %s216_s10, 7  ;;  %s1594_s22 = scalar_lea.sflag [#allocation3], %s216_s10 }
  0x19   : > { %982 = vmatprep.mubr.msk.f32.mxu0 %vm255_vm0, %v226_v17  ;;  %1073 = vmatpush3.bf16.msra.mxu0 %v1070_v13  ;;  %v229_v26 = vld [vmem:[%s1406_s14 + $0x18] sm:$0xff]  ;;  %v230_v27 = vld [vmem:[%s1406_s14 + $0x20] sm:$0xff]  ;;  %v231_v31 = vld [vmem:[%s1406_s14 + $0x28] sm:$0xff]  ;;  %s1550_s13 = scalar_lea.vmem [#allocation2], %s889_s12 }
  0x1a   : > { %1075 = vmatprep.subr.bf16.mxu0 %v1074_v11  ;;  %v232_v32 = vld [vmem:[%s1406_s14 + $0x30] sm:$0xff]  ;;  %v233_v36 = vld [vmem:[%s1406_s14 + $0x38] sm:$0xff]  ;;  %v234_v37 = vld [vmem:[%s1406_s14 + $0x40] sm:$0xff]  ;;  %s823_s16 = sshll.u32 %s1550_s13, 4  ;;  %s1587_s16 = int_to_ptr.vmem [resolvable:$true] %s823_s16 }
  0x1b   : > { %1116 = vmatpush3.bf16.msra.mxu1 %v1082_v18  ;;  %v235_v39 = vld [vmem:[%s1406_s14 + $0x48] sm:$0xff]  ;;  %v236_v40 = vld [vmem:[%s1406_s14 + $0x50] sm:$0xff]  ;;  %v237_v41 = vld [vmem:[%s1406_s14 + $0x58] sm:$0xff]  ;;  %s1227_s25 = scalar_lea.vmem %s1587_s16, 2048  ;;  %p1234_p0 = scmp.lt.s32.totalorder %s1587_s16, %s1232_s30 }
  0x1c   : > { %983 = vmatmul.mubr.msk.f32.vlgmr.msra.gmra.mrb[0].mxu0 %vm255_vm0, %v227_v21  ;;  %1109 = vmatprep.subr.bf16.mxu1 %v1086_v23  ;;  %v238_v42 = vld [vmem:[%s1406_s14 + $0x60] sm:$0xff]  ;;  %v239_v43 = vld [vmem:[%s1406_s14 + $0x68] sm:$0xff]  ;;  %v240_v44 = vld [vmem:[%s1406_s14 + $0x70] sm:$0xff]  ;;  %p1228_p11 = scmp.ne.s32.totalorder %s1587_s16, %s1227_s25  ;;  %p1235_p1 = scmp.lt.s32.totalorder %s1233_s6, %s1227_s25 }
  0x1d   : > { %985 = vmatprep.mubr.msk.f32.mxu0 %vm255_vm0, %v228_v22  ;;  %1077 = vmatpush3.bf16.msra.mxu0 %v1074_v11  ;;  %v241_v45 = vld [vmem:[%s1406_s14 + $0x78] sm:$0xff] }
  0x1e   : > { %1079 = vmatprep.subr.bf16.mxu0 %v1078_v14  ;;  %p1229_p12 = pnand %p1228_p11, %p1362_p5  ;;  %p1236_p2 = por %p1235_p1, %p1234_p0 }
  0x1f   : > { %1117 = vmatpush3.bf16.msra.mxu1 %v1086_v23 }
  0x20   : > { %986 = vmatmul.mubr.msk.f32.gmra.mrb[2].mxu0 %vm255_vm0, %v229_v26  ;;  %1110 = vmatprep.subr.bf16.mxu1 %v1090_v28  ;;  %p1230_p13 = pneg %p1229_p12 }
  0x21   : > { %988 = vmatprep.mubr.msk.f32.mxu0 %vm255_vm0, %v230_v27  ;;  %1081 = vmatpush3.bf16.msra.mxu0 %v1078_v14 }
  0x22   : > { %1083 = vmatprep.subr.bf16.mxu0 %v1082_v18  ;;  %p1237_p3 = pnand %p1236_p2, %p1230_p13 }
  0x23   : > { %1118 = vmatpush3.bf16.msra.mxu1 %v1090_v28 }
  0x24   : > { %989 = vmatmul.mubr.msk.f32.gmra.mrb[4].mxu0 %vm255_vm0, %v231_v31  ;;  %1111 = vmatprep.subr.bf16.mxu1 %v1094_v33 }
  0x25   : > { %991 = vmatprep.mubr.msk.f32.mxu0 %vm255_vm0, %v232_v32  ;;  %1085 = vmatpush3.bf16.msra.mxu0 %v1082_v18 }
  0x26   : > { %1087 = vmatprep.subr.bf16.mxu0 %v1086_v23 }
  0x27   : > { %1119 = vmatpush3.bf16.msra.mxu1 %v1094_v33 }
  0x28   : > { %992 = vmatmul.mubr.msk.f32.gmra.mrb[6].mxu0 %vm255_vm0, %v233_v36  ;;  %1112 = vmatprep.subr.bf16.mxu1 %v1098_v38 }
  0x29   : > { %994 = vmatprep.mubr.msk.f32.mxu0 %vm255_vm0, %v234_v37  ;;  %1089 = vmatpush3.bf16.msra.mxu0 %v1086_v23 }
  0x2a   : > { %1091 = vmatprep.subr.bf16.mxu0 %v1090_v28 }
  0x2b   : > { %1120 = vmatpush3.bf16.msra.mxu1 %v1098_v38 }
  0x2c   : > { %995 = vmatmul.mubr.msk.f32.gmra.mrb[8].mxu0 %vm255_vm0, %v235_v39  ;;  %1113 = vmatprep.subr.bf16.mxu1 %v1102_v48 }
  0x2d   : > { %997 = vmatprep.mubr.msk.f32.mxu0 %vm255_vm0, %v236_v40  ;;  %1093 = vmatpush3.bf16.msra.mxu0 %v1090_v28 }
  0x2e   : > { %1095 = vmatprep.subr.bf16.mxu0 %v1094_v33 }
  0x2f   : > { %1121 = vmatpush3.bf16.msra.mxu1 %v1102_v48 }
  0x30   : > { %998 = vmatmul.mubr.msk.f32.gmra.mrb[10].mxu0 %vm255_vm0, %v237_v41 }
  0x31   : > { %1000 = vmatprep.mubr.msk.f32.mxu0 %vm255_vm0, %v238_v42  ;;  %1097 = vmatpush3.bf16.msra.mxu0 %v1094_v33 }
  0x32   : > { %1099 = vmatprep.subr.bf16.mxu0 %v1098_v38 }
  0x34   : > { %1001 = vmatmul.mubr.msk.f32.gmra.mrb[12].mxu0 %vm255_vm0, %v239_v43 }
  0x35   : > { %1003 = vmatprep.mubr.msk.f32.mxu0 %vm255_vm0, %v240_v44  ;;  %1101 = vmatpush3.bf16.msra.mxu0 %v1098_v38 }
  0x36   : > { %1103 = vmatprep.subr.bf16.mxu0 %v1102_v48 }
  0x38   : > { %1004 = vmatmul.mubr.msk.f32.gmra.mrb[14].mxu0 %vm255_vm0, %v241_v45 }
  0x39   : > { %1105 = vmatpush3.bf16.msra.mxu0 %v1102_v48 }
  0xef   : > { %v984_v50 = vpop.f32.mrb[0].mxu0 }
  0xf0   : > { %v376_v51 = vadd.f32 %v984_v50, %v892_v49  ;;  %v370_v52 = vpop.f32.mrb[1].mxu0 }
  0xf1   : > { %v371_v53 = vadd.f32 %v892_v49, %v370_v52 }
  0xf2   : > { %v450_v56 = vmax.f32 %v376_v51, 0.0 }
  0xf3   : > { %v449_v54 = vmax.f32 %v371_v53, 0.0  ;;  %v987_v55 = vpop.f32.mrb[2].mxu0 }
  0xf4   : > { %v386_v57 = vadd.f32 %v987_v55, %v892_v49  ;;  %v380_v58 = vpop.f32.mrb[3].mxu0 }
  0xf5   : > { %v381_v59 = vadd.f32 %v892_v49, %v380_v58  ;;  %1038 = vmatprep.mubr.f32.mxu0 %v449_v54 }
  0xf6   : > { %1039 = vmatmul.mubr.f32.vlgmr.msra.gmra.mrb[16].mxu0 %v450_v56  ;;  %v452_v62 = vmax.f32 %v386_v57, 0.0 }
  0xf7   : > { %v451_v60 = vmax.f32 %v381_v59, 0.0  ;;  %v990_v61 = vpop.f32.mrb[4].mxu0 }
  0xf8   : > { %v396_v63 = vadd.f32 %v990_v61, %v892_v49  ;;  %v390_v0 = vpop.f32.mrb[5].mxu0 }
  0xf9   : > { %1041 = vmatprep.mubr.f32.mxu0 %v451_v60  ;;  %v391_v1 = vadd.f32 %v892_v49, %v390_v0 }
  0xfa   : > { %v454_v2 = vmax.f32 %v396_v63, 0.0  ;;  %1042 = vmatmul.mubr.f32.gmra.mrb[18].mxu0 %v452_v62 }
  0xfb   : > { %v993_v3 = vpop.f32.mrb[6].mxu0  ;;  %v453_v4 = vmax.f32 %v391_v1, 0.0 }
  0xfc   : > { %v406_v5 = vadd.f32 %v993_v3, %v892_v49  ;;  %v400_v6 = vpop.f32.mrb[7].mxu0 }
  0xfd   : > { %v401_v7 = vadd.f32 %v892_v49, %v400_v6  ;;  %1044 = vmatprep.mubr.f32.mxu1 %v453_v4 }
  0xfe   : > { %v456_v8 = vmax.f32 %v406_v5, 0.0  ;;  %1045 = vmatmul.mubr.f32.vlgmr.msra.gmra.mrb[0].mxu1 %v454_v2 }
  0xff   : > { %v455_v9 = vmax.f32 %v401_v7, 0.0  ;;  %v996_v10 = vpop.f32.mrb[8].mxu0 }
 0x100   : > { %v416_v11 = vadd.f32 %v996_v10, %v892_v49  ;;  %v410_v12 = vpop.f32.mrb[9].mxu0 }
 0x101   : > { %v411_v13 = vadd.f32 %v892_v49, %v410_v12  ;;  %1047 = vmatprep.mubr.f32.mxu1 %v455_v9 }
 0x102   : > { %v458_v14 = vmax.f32 %v416_v11, 0.0  ;;  %1048 = vmatmul.mubr.f32.gmra.mrb[2].mxu1 %v456_v8 }
 0x103   : > { %v457_v15 = vmax.f32 %v411_v13, 0.0  ;;  %v999_v16 = vpop.f32.mrb[10].mxu0 }
 0x104   : > { %v426_v17 = vadd.f32 %v999_v16, %v892_v49  ;;  %v420_v18 = vpop.f32.mrb[11].mxu0 }
 0x105   : > { %v421_v19 = vadd.f32 %v892_v49, %v420_v18  ;;  %1050 = vmatprep.mubr.f32.mxu1 %v457_v15 }
 0x106   : > { %v460_v20 = vmax.f32 %v426_v17, 0.0  ;;  %1051 = vmatmul.mubr.f32.gmra.mrb[4].mxu1 %v458_v14 }
 0x107   : > { %v459_v21 = vmax.f32 %v421_v19, 0.0  ;;  %v1002_v22 = vpop.f32.mrb[12].mxu0 }
 0x108   : > { %v436_v23 = vadd.f32 %v1002_v22, %v892_v49  ;;  %v430_v24 = vpop.f32.mrb[13].mxu0 }
 0x109   : > { %v431_v25 = vadd.f32 %v892_v49, %v430_v24  ;;  %1053 = vmatprep.mubr.f32.mxu1 %v459_v21 }
 0x10a   : > { %v462_v26 = vmax.f32 %v436_v23, 0.0  ;;  %1054 = vmatmul.mubr.f32.gmra.mrb[6].mxu1 %v460_v20 }
 0x10b   : > { %v461_v27 = vmax.f32 %v431_v25, 0.0  ;;  %v1005_v28 = vpop.f32.mrb[14].mxu0 }
 0x10c   : > { %v446_v29 = vadd.f32 %v1005_v28, %v892_v49  ;;  %v440_v30 = vpop.f32.mrb[15].mxu0 }
 0x10d   : > { %v441_v31 = vadd.f32 %v892_v49, %v440_v30  ;;  %1056 = vmatprep.mubr.f32.mxu1 %v461_v27 }
 0x10e   : > { %v464_v32 = vmax.f32 %v446_v29, 0.0  ;;  %1057 = vmatmul.mubr.f32.gmra.mrb[8].mxu1 %v462_v26 }
 0x10f   : > { %v463_v33 = vmax.f32 %v441_v31, 0.0 }
 0x111   : > { %1059 = vmatprep.mubr.f32.mxu1 %v463_v33 }
 0x112   : > { %1060 = vmatmul.mubr.f32.gmra.mrb[10].mxu1 %v464_v32 }
 0x1c9   : > { %v1040_v35 = vpop.f32.mrb[16].mxu0 }
 0x1ca   : > { %v560_v36 = vadd.f32 %v1040_v35, %v909_v34  ;;  %v554_v37 = vpop.f32.mrb[17].mxu0 }
 0x1cb   : > { %v555_v39 = vadd.f32 %v909_v34, %v554_v37 }
 0x1cc   : > { %635 = vmax.xlane.f32.xlu0 %v560_v36 }
 0x1cd   : > { %v1043_v38 = vpop.f32.mrb[18].mxu0 }
 0x1ce   : > { %v570_v40 = vadd.f32 %v1043_v38, %v909_v34  ;;  %v564_v41 = vpop.f32.mrb[19].mxu0 }
 0x1cf   : > { %v565_v43 = vadd.f32 %v909_v34, %v564_v41 }
 0x1d0   : > { %639 = vmax.xlane.f32.xlu1 %v570_v40  ;;  %633 = vmax.xlane.f32.xlu0 %v555_v39 }
 0x1d1   : > { %v1046_v42 = vpop.f32.mrb[0].mxu1 }
 0x1d2   : > { %v574_v44 = vpop.f32.mrb[1].mxu1  ;;  %v580_v47 = vadd.f32 %v1046_v42, %v909_v34 }
 0x1d3   : > { %v575_v45 = vadd.f32 %v909_v34, %v574_v44 }
 0x1d4   : > { %637 = vmax.xlane.f32.xlu1 %v565_v43 }
 0x1d5   : > { %v1049_v46 = vpop.f32.mrb[2].mxu1  ;;  %641 = vmax.xlane.f32.xlu0 %v575_v45 }
 0x1d6   : > { %v584_v48 = vpop.f32.mrb[3].mxu1  ;;  %v590_v51 = vadd.f32 %v1049_v46, %v909_v34 }
 0x1d7   : > { %v585_v49 = vadd.f32 %v909_v34, %v584_v48 }
 0x1d8   : > { %643 = vmax.xlane.f32.xlu1 %v580_v47 }
 0x1d9   : > { %v1052_v50 = vpop.f32.mrb[4].mxu1  ;;  %645 = vmax.xlane.f32.xlu0 %v585_v49 }
 0x1da   : > { %v594_v52 = vpop.f32.mrb[5].mxu1  ;;  %v600_v55 = vadd.f32 %v1052_v50, %v909_v34 }
 0x1db   : > { %v595_v53 = vadd.f32 %v909_v34, %v594_v52 }
 0x1dc   : > { %647 = vmax.xlane.f32.xlu1 %v590_v51 }
 0x1dd   : > { %v1055_v54 = vpop.f32.mrb[6].mxu1  ;;  %649 = vmax.xlane.f32.xlu0 %v595_v53 }
 0x1de   : > { %v604_v56 = vpop.f32.mrb[7].mxu1  ;;  %v610_v59 = vadd.f32 %v1055_v54, %v909_v34 }
 0x1df   : > { %v605_v57 = vadd.f32 %v909_v34, %v604_v56 }
 0x1e0   : > { %651 = vmax.xlane.f32.xlu1 %v600_v55 }
 0x1e1   : > { %v1058_v58 = vpop.f32.mrb[8].mxu1  ;;  %653 = vmax.xlane.f32.xlu0 %v605_v57 }
 0x1e2   : > { %v614_v60 = vpop.f32.mrb[9].mxu1  ;;  %v1485_v63 = vadd.f32 %v1058_v58, %v909_v34 }
 0x1e3   : > { %v1482_v61 = vadd.f32 %v909_v34, %v614_v60 }
 0x1e4   : > { %655 = vmax.xlane.f32.xlu1 %v610_v59 }
 0x1e5   : > { %v1061_v62 = vpop.f32.mrb[10].mxu1  ;;  %657 = vmax.xlane.f32.xlu0 %v1482_v61 }
 0x1e6   : > { %v624_v0 = vpop.f32.mrb[11].mxu1  ;;  %v1491_v2 = vadd.f32 %v1061_v62, %v909_v34 }
 0x1e7   : > { %v1487_v1 = vadd.f32 %v909_v34, %v624_v0 }
 0x1e8   : > { %659 = vmax.xlane.f32.xlu1 %v1485_v63 }
 0x1e9   : > { %661 = vmax.xlane.f32.xlu0 %v1487_v1 }
 0x1ec   : > { %663 = vmax.xlane.f32.xlu1 %v1491_v2 }
 0x259   : > { %v636_v3 = vpop.xlane.xlu0 %635 }
 0x25a   : > { %v1494_v4 = vsub.f32 %v560_v36, %v636_v3 }
 0x25c   : > { %v683_v5 = vmul.f32 1.442695, %v1494_v4 }
 0x25d   : > { %v640_v6 = vpop.xlane.xlu1 %639  ;;  %v634_v7 = vpop.xlane.xlu0 %633 }
 0x25e   : > { %1163 = vpow2.f32 %v683_v5  ;;  %v1497_v8 = vsub.f32 %v570_v40, %v640_v6  ;;  %v1499_v9 = vsub.f32 %v555_v39, %v634_v7 }
 0x260   : > { %v687_v10 = vmul.f32 1.442695, %v1497_v8  ;;  %v681_v11 = vmul.f32 1.442695, %v1499_v9 }
 0x261   : > { %v638_v12 = vpop.xlane.xlu1 %637 }
 0x262   : > { %1165 = vpow2.f32 %v687_v10  ;;  %v1503_v13 = vsub.f32 %v565_v43, %v638_v12  ;;  %v642_v14 = vpop.xlane.xlu0 %641 }
 0x263   : > { %1167 = vpow2.f32 %v681_v11  ;;  %v1505_v15 = vsub.f32 %v575_v45, %v642_v14 }
 0x264   : > { %v685_v16 = vmul.f32 1.442695, %v1503_v13 }
 0x265   : > { %v644_v17 = vpop.xlane.xlu1 %643  ;;  %v689_v20 = vmul.f32 1.442695, %v1505_v15 }
 0x266   : > { %1169 = vpow2.f32 %v685_v16  ;;  %v1508_v18 = vsub.f32 %v580_v47, %v644_v17  ;;  %v646_v19 = vpop.xlane.xlu0 %645 }
 0x267   : > { %v1511_v21 = vsub.f32 %v585_v49, %v646_v19 }
 0x268   : > { %v1164_v22 = vpop.eup %1163  ;;  %v691_v23 = vmul.f32 1.442695, %v1508_v18 }
 0x269   : > { %715 = vadd.xlane.f32.xlu1 %v1164_v22  ;;  %v648_v24 = vpop.xlane.xlu1 %647  ;;  %v693_v27 = vmul.f32 1.442695, %v1511_v21 }
 0x26a   : > { %1171 = vpow2.f32 %v691_v23  ;;  %v1514_v25 = vsub.f32 %v590_v51, %v648_v24  ;;  %v650_v26 = vpop.xlane.xlu0 %649 }
 0x26b   : > { %1173 = vpow2.f32 %v689_v20  ;;  %v1517_v28 = vsub.f32 %v595_v53, %v650_v26 }
 0x26c   : > { %v1166_v29 = vpop.eup %1165  ;;  %v695_v30 = vmul.f32 1.442695, %v1514_v25 }
 0x26d   : > { %v1168_v31 = vpop.eup %1167  ;;  %719 = vadd.xlane.f32.xlu1 %v1166_v29  ;;  %v652_v32 = vpop.xlane.xlu1 %651  ;;  %v697_v35 = vmul.f32 1.442695, %v1517_v28 }
 0x26e   : > { %1175 = vpow2.f32 %v695_v30  ;;  %v1520_v33 = vsub.f32 %v600_v55, %v652_v32  ;;  %713 = vadd.xlane.f32.xlu0 %v1168_v31  ;;  %v654_v34 = vpop.xlane.xlu0 %653 }
 0x26f   : > { %1177 = vpow2.f32 %v693_v27  ;;  %v1523_v36 = vsub.f32 %v605_v57, %v654_v34 }
 0x270   : > { %v1170_v37 = vpop.eup %1169  ;;  %v699_v38 = vmul.f32 1.442695, %v1520_v33 }
 0x271   : > { %v656_v39 = vpop.xlane.xlu1 %655  ;;  %v701_v42 = vmul.f32 1.442695, %v1523_v36 }
 0x272   : > { %1179 = vpow2.f32 %v699_v38  ;;  %v1526_v40 = vsub.f32 %v610_v59, %v656_v39  ;;  %717 = vadd.xlane.f32.xlu0 %v1170_v37  ;;  %v658_v41 = vpop.xlane.xlu0 %657 }
 0x273   : > { %1181 = vpow2.f32 %v697_v35  ;;  %v1530_v43 = vsub.f32 %v1482_v61, %v658_v41 }
 0x274   : > { %v1172_v44 = vpop.eup %1171  ;;  %v703_v45 = vmul.f32 1.442695, %v1526_v40 }
 0x275   : > { %v1174_v46 = vpop.eup %1173  ;;  %723 = vadd.xlane.f32.xlu1 %v1172_v44  ;;  %v660_v47 = vpop.xlane.xlu1 %659  ;;  %v705_v50 = vmul.f32 1.442695, %v1530_v43 }
 0x276   : > { %1183 = vpow2.f32 %v703_v45  ;;  %v1534_v48 = vsub.f32 %v1485_v63, %v660_v47  ;;  %721 = vadd.xlane.f32.xlu0 %v1174_v46  ;;  %v662_v49 = vpop.xlane.xlu0 %661 }
 0x277   : > { %1185 = vpow2.f32 %v701_v42  ;;  %v1538_v51 = vsub.f32 %v1487_v1, %v662_v49 }
 0x278   : > { %v1176_v52 = vpop.eup %1175  ;;  %v707_v53 = vmul.f32 1.442695, %v1534_v48 }
 0x279   : > { %v1178_v54 = vpop.eup %1177  ;;  %727 = vadd.xlane.f32.xlu1 %v1176_v52  ;;  %v664_v55 = vpop.xlane.xlu1 %663  ;;  %v709_v57 = vmul.f32 1.442695, %v1538_v51 }
 0x27a   : > { %1187 = vpow2.f32 %v707_v53  ;;  %v1542_v56 = vsub.f32 %v1491_v2, %v664_v55  ;;  %725 = vadd.xlane.f32.xlu0 %v1178_v54 }
 0x27b   : > { %1189 = vpow2.f32 %v705_v50 }
 0x27c   : > { %v1180_v58 = vpop.eup %1179  ;;  %v711_v59 = vmul.f32 1.442695, %v1542_v56 }
 0x27d   : > { %v1182_v60 = vpop.eup %1181  ;;  %731 = vadd.xlane.f32.xlu1 %v1180_v58 }
 0x27e   : > { %1191 = vpow2.f32 %v711_v59  ;;  %729 = vadd.xlane.f32.xlu0 %v1182_v60 }
 0x27f   : > { %1193 = vpow2.f32 %v709_v57 }
 0x280   : > { %v1184_v61 = vpop.eup %1183 }
 0x281   : > { %v1186_v62 = vpop.eup %1185  ;;  %735 = vadd.xlane.f32.xlu1 %v1184_v61 }
 0x282   : > { %733 = vadd.xlane.f32.xlu0 %v1186_v62 }
 0x284   : > { %v1188_v63 = vpop.eup %1187 }
 0x285   : > { %v1190_v0 = vpop.eup %1189  ;;  %739 = vadd.xlane.f32.xlu1 %v1188_v63 }
 0x286   : > { %737 = vadd.xlane.f32.xlu0 %v1190_v0 }
 0x288   : > { %v1192_v1 = vpop.eup %1191 }
 0x289   : > { %v1194_v2 = vpop.eup %1193  ;;  %743 = vadd.xlane.f32.xlu1 %v1192_v1 }
 0x28a   : > { %741 = vadd.xlane.f32.xlu0 %v1194_v2 }
 0x2f6   : > { %v716_v3 = vpop.xlane.xlu1 %715 }
 0x2f7   : > { %1195 = vlog2.f32 %v716_v3 }
 0x2fa   : > { %v720_v5 = vpop.xlane.xlu1 %719 }
 0x2fb   : > { %1197 = vlog2.f32 %v720_v5  ;;  %v714_v6 = vpop.xlane.xlu0 %713 }
 0x2fc   : > { %1199 = vlog2.f32 %v714_v6 }
 0x2ff   : > { %v718_v7 = vpop.xlane.xlu0 %717 }
 0x300   : > { %1201 = vlog2.f32 %v718_v7 }
 0x301   : > { %v1196_v10 = vpop.eup %1195 }
 0x302   : > { %v748_v11 = vmul.f32 0.6931472, %v1196_v10  ;;  %v724_v12 = vpop.xlane.xlu1 %723 }
 0x303   : > { %1203 = vlog2.f32 %v724_v12  ;;  %v722_v14 = vpop.xlane.xlu0 %721 }
 0x304   : > { %v778_v16 = vsub.f32 %v1494_v4, %v748_v11  ;;  %1205 = vlog2.f32 %v722_v14 }
 0x305   : > { %v1198_v17 = vpop.eup %1197 }
 0x306   : > { %v1200_v19 = vpop.eup %1199  ;;  %794 = vst [vmem:[%s1550_s13 + $0x8] sm:$0xff] %v778_v16  ;;  %v752_v20 = vmul.f32 0.6931472, %v1198_v17  ;;  %v728_v22 = vpop.xlane.xlu1 %727 }
 0x307   : > { %v746_v23 = vmul.f32 0.6931472, %v1200_v19  ;;  %1207 = vlog2.f32 %v728_v22  ;;  %v726_v24 = vpop.xlane.xlu0 %725 }
 0x308   : > { %v780_v26 = vsub.f32 %v1497_v8, %v752_v20  ;;  %1209 = vlog2.f32 %v726_v24 }
 0x309   : > { %v777_v4 = vsub.f32 %v1499_v9, %v746_v23 }
 0x30a   : > { %v1202_v27 = vpop.eup %1201  ;;  %796 = vst [vmem:[%s1550_s13 + $0x18] sm:$0xff] %v780_v26  ;;  %v732_v29 = vpop.xlane.xlu1 %731 }
 0x30b   : > { %793 = vst [vmem:[%s1550_s13] sm:$0xff] %v777_v4  ;;  %v750_v30 = vmul.f32 0.6931472, %v1202_v27  ;;  %1211 = vlog2.f32 %v732_v29  ;;  %v730_v31 = vpop.xlane.xlu0 %729 }
 0x30c   : > { %1213 = vlog2.f32 %v730_v31 }
 0x30d   : > { %v1204_v32 = vpop.eup %1203  ;;  %v779_v34 = vsub.f32 %v1503_v13, %v750_v30 }
 0x30e   : > { %v1206_v35 = vpop.eup %1205  ;;  %v756_v37 = vmul.f32 0.6931472, %v1204_v32  ;;  %v736_v8 = vpop.xlane.xlu1 %735 }
 0x30f   : > { %795 = vst [vmem:[%s1550_s13 + $0x10] sm:$0xff] %v779_v34  ;;  %v754_v38 = vmul.f32 0.6931472, %v1206_v35  ;;  %1215 = vlog2.f32 %v736_v8  ;;  %v734_v9 = vpop.xlane.xlu0 %733 }
 0x310   : > { %v782_v39 = vsub.f32 %v1508_v18, %v756_v37  ;;  %1217 = vlog2.f32 %v734_v9 }
 0x311   : > { %v1208_v41 = vpop.eup %1207  ;;  %v781_v42 = vsub.f32 %v1505_v15, %v754_v38 }
 0x312   : > { %v1210_v44 = vpop.eup %1209  ;;  %798 = vst [vmem:[%s1550_s13 + $0x28] sm:$0xff] %v782_v39  ;;  %v760_v45 = vmul.f32 0.6931472, %v1208_v41  ;;  %v740_v13 = vpop.xlane.xlu1 %739 }
 0x313   : > { %797 = vst [vmem:[%s1550_s13 + $0x20] sm:$0xff] %v781_v42  ;;  %v758_v46 = vmul.f32 0.6931472, %v1210_v44  ;;  %1219 = vlog2.f32 %v740_v13  ;;  %v738_v47 = vpop.xlane.xlu0 %737 }
 0x314   : > { %v784_v49 = vsub.f32 %v1514_v25, %v760_v45  ;;  %1221 = vlog2.f32 %v738_v47 }
 0x315   : > { %v1212_v50 = vpop.eup %1211  ;;  %v783_v18 = vsub.f32 %v1511_v21, %v758_v46 }
 0x316   : > { %v1214_v52 = vpop.eup %1213  ;;  %800 = vst [vmem:[%s1550_s13 + $0x38] sm:$0xff] %v784_v49  ;;  %v764_v15 = vmul.f32 0.6931472, %v1212_v50  ;;  %v744_v53 = vpop.xlane.xlu1 %743 }
 0x317   : > { %799 = vst [vmem:[%s1550_s13 + $0x30] sm:$0xff] %v783_v18  ;;  %v762_v54 = vmul.f32 0.6931472, %v1214_v52  ;;  %1223 = vlog2.f32 %v744_v53  ;;  %v742_v55 = vpop.xlane.xlu0 %741 }
 0x318   : > { %v786_v57 = vsub.f32 %v1520_v33, %v764_v15  ;;  %1225 = vlog2.f32 %v742_v55 }
 0x319   : > { %v1216_v25 = vpop.eup %1215  ;;  %v785_v58 = vsub.f32 %v1517_v28, %v762_v54 }
 0x31a   : > { %v1218_v59 = vpop.eup %1217  ;;  %802 = vst [vmem:[%s1550_s13 + $0x48] sm:$0xff] %v786_v57  ;;  %v768_v21 = vmul.f32 0.6931472, %v1216_v25 }
 0x31b   : > { %801 = vst [vmem:[%s1550_s13 + $0x40] sm:$0xff] %v785_v58  ;;  %v766_v60 = vmul.f32 0.6931472, %v1218_v59 }
 0x31c   : > { %v788_v61 = vsub.f32 %v1526_v40, %v768_v21 }
 0x31d   : > { %v1220_v62 = vpop.eup %1219  ;;  %v787_v63 = vsub.f32 %v1523_v36, %v766_v60 }
 0x31e   : > { %v1222_v0 = vpop.eup %1221  ;;  %804 = vst [vmem:[%s1550_s13 + $0x58] sm:$0xff] %v788_v61  ;;  %v772_v33 = vmul.f32 0.6931472, %v1220_v62 }
 0x31f   : > { %803 = vst [vmem:[%s1550_s13 + $0x50] sm:$0xff] %v787_v63  ;;  %v770_v28 = vmul.f32 0.6931472, %v1222_v0 }
 0x320   : > { %v790_v1 = vsub.f32 %v1534_v48, %v772_v33 }
 0x321   : > { %v1224_v2 = vpop.eup %1223  ;;  %v789_v3 = vsub.f32 %v1530_v43, %v770_v28 }
 0x322   : > { %v1226_v40 = vpop.eup %1225  ;;  %806 = vst [vmem:[%s1550_s13 + $0x68] sm:$0xff] %v790_v1  ;;  %v776_v5 = vmul.f32 0.6931472, %v1224_v2 }
 0x323   : > { %805 = vst [vmem:[%s1550_s13 + $0x60] sm:$0xff] %v789_v3  ;;  %v774_v36 = vmul.f32 0.6931472, %v1226_v40 }
 0x324   : > { %v792_v6 = vsub.f32 %v1542_v56, %v776_v5 }
 0x325   : > { %v791_v43 = vsub.f32 %v1538_v51, %v774_v36 }
 0x326   : > { %808 = vst [vmem:[%s1550_s13 + $0x78] sm:$0xff] %v792_v6 }
 0x327   : > { %807 = vst [vmem:[%s1550_s13 + $0x70] sm:$0xff] %v791_v43 }
 0x328   : > { %1240 = shalt.err (!%p1237_p3)
}
 0x329   : > { %s1241_s7 = scalar_lea.hbm %s1585_s11, 2048  ;;  %s1245_s9 = scalar_lea.hbm %s1640_s5, 6144 }
 0x32a   : > { %p1242_p4 = scmp.ne.s32.totalorder %s1585_s11, %s1241_s7  ;;  %p1246_p9 = scmp.lt.u32.totalorder %s1585_s11, %s1640_s5 }
 0x32b   : > { %p1247_p10 = scmp.lt.u32.totalorder %s1245_s9, %s1241_s7  ;;  %p1249_p12 = scmp.lt.u32.totalorder %s1241_s7, %s1585_s11 }
 0x32c   : > { %p1243_p7 = pnand %p1242_p4, %p1362_p5 }
 0x32d   : > { %p1248_p11 = por %p1247_p10, %p1246_p9 }
 0x32e   : > { %p1244_p8 = pneg %p1243_p7 }
 0x32f   : > { %p1250_p13 = por %p1249_p12, %p1248_p11 }
 0x331   : > { %p1251_p0 = pnand %p1250_p13, %p1244_p8 }
 0x333   : > { %1254 = shalt.err (!%p1251_p0)
}
 0x334   : > { %s1292_s13 = smov 128   ;;  %s1293_s15 = smov 8  }
 0x335   : > { %1122 = dma.vmem_to_hbm [thread:$0]  (%p1362_p5), %s1587_s16, 2048, %s1585_s11, %s1594_s22, %s1292_s13, %s1292_s13, %s1293_s15  }
 0x336 PF: > { %p1128_p1 = scmp.ge.s32.totalorder %s1289_s21, 2  ;;  %s838_s17 = sand.u32 1, %s1277_s18  }
 0x337   : > { %s839_s23 = scalar_lea.sflag [#allocation3], %s838_s17 }
 0x338   : > { %p1125_p2 = pnand %p1128_p1, %p1366_p6 }
 0x33a   : > { %1272 = dma.done.wait (!%p1125_p2), %s839_s23, 2048  }
 0x33b   : > { %1274 = vsyncadd (!%p1125_p2), %s839_s23, 4294965248  ;;  %p15_p3 = scmp.ge.s32.totalorder %s1349_s24, 5   ;;  %s1643_s18 = smov %s1281_s19 }
 0x33c   : > { %s1644_s19 = smov %s1285_s20  ;;  %s1645_s20 = smov %s1360_s27 }
 0x33d   : > { %s1646_s21 = smov %s1349_s24  ;;  %17 = sbr.rel (!%p15_p3) target bundleno = 3 (0x3), region = 75 }
 0x344   :  { %844 = vsyncpa [#allocation3], 1 }
 0x345   :  { %846 = vsyncpa [#allocation3 + $0x1], 1 }

</bundles_post_ra>
